<compile_context>
chip_gen: v7x
topology: tpu7x:2x2x1
jax: 0.10.0
libtpu: 0.0.40
codegen_flags: <defaults>
</compile_context>

<pallas_src>
import functools

import jax
import jax.numpy as jnp
from jax.experimental import pallas as pl
from jax.experimental.pallas import tpu as pltpu


def _round_up(n, m):
    return ((n + m - 1) // m) * m


def _apply_activation(x, activation):
    if activation == "relu":
        return jnp.maximum(x, 0.0)
    elif activation == "sigmoid":
        return jax.nn.sigmoid(x)
    elif activation == "tanh":
        return jnp.tanh(x)
    else:
        raise ValueError(f"Không hỗ trợ activation: {activation}")


def _mlp_fused_kernel(*refs, n_layers, activation):
    """Fused MLP forward over one batch tile.

    refs = (x_ref, w0, b0, w1, b1, ..., o_ref)
      x_ref : [TB, Fin]               bf16  (batch tile, streamed over the grid)
      w_l   : [fin_pad_l, fout_pad_l] bf16  (whole array, VMEM-resident)
      b_l   : [1, fout_pad_l]         f32
      o_ref : [TB, OUT_PAD]           f32
    """
    x_ref = refs[0]
    o_ref = refs[-1]

    h = x_ref[...]                                   # bf16 activations on-chip
    for layer in range(n_layers):
        w = refs[1 + 2 * layer][...]                 # bf16 [fin_pad, fout_pad]
        b = refs[2 + 2 * layer][...]                 # f32  [1, fout_pad]
        y = jnp.dot(h, w, preferred_element_type=jnp.float32) + b  # f32 acc
        if layer < n_layers - 1:
            # Activation epilogue in f32 (safe on v5e), carried bf16 to next MXU op.
            h = _apply_activation(y, activation).astype(jnp.bfloat16)
        else:
            h = y                                    # last layer: no activation
    o_ref[...] = h.astype(o_ref.dtype)


def mlp_forward(x_pad, weights, biases, *, activation, out_pad_width, tb,
                cost, vmem_limit_bytes):
    """One pallas_call over the whole MLP, batch-tiled grid, resident weights."""
    bpad, fin = x_pad.shape
    n_layers = len(weights)
    grid = (bpad // tb,)

    in_specs = [pl.BlockSpec((tb, fin), lambda i: (i, 0))]        # x: streamed
    operands = [x_pad]
    for w, b in zip(weights, biases):
        in_specs.append(pl.BlockSpec(w.shape, lambda i: (0, 0)))  # resident
        in_specs.append(pl.BlockSpec(b.shape, lambda i: (0, 0)))  # resident
        operands.append(w)
        operands.append(b)

    kernel = functools.partial(_mlp_fused_kernel,
                               n_layers=n_layers, activation=activation)
    return pl.pallas_call(
        kernel,
        out_shape=jax.ShapeDtypeStruct((bpad, out_pad_width), jnp.float32),
        grid=grid,
        in_specs=in_specs,
        out_specs=pl.BlockSpec((tb, out_pad_width), lambda i: (i, 0)),
        compiler_params=pltpu.CompilerParams(
            dimension_semantics=("parallel",),          # megacore / dual-TC split
            vmem_limit_bytes=vmem_limit_bytes),
        cost_estimate=cost,
    )(*operands)


class NeuralNetPallas:
    """JAX/Pallas equivalent of the PyTorch NeuralNet MLP (forward pass only)."""

    OUT_FEATURES = 10

    def __init__(self, input_size, num_layers, num_nodes, activation, key):
        if activation not in ("relu", "sigmoid", "tanh"):
            raise ValueError(f"Không hỗ trợ activation: {activation}")
        self.activation = activation

        # Layer dims: input_size -> num_nodes -> ... -> num_nodes -> 10
        dims = [input_size] + [num_nodes] * num_layers + [self.OUT_FEATURES]
        self.dims = dims

        self.params = []            # unpadded f32 (w[in,out], b[out]) reference
        w_padded, b_padded = [], []
        for idx, (fin, fout) in enumerate(zip(dims[:-1], dims[1:])):
            key, kw, kb = jax.random.split(key, 3)
            # Mirrors torch.nn.Linear's U(-1/sqrt(fin), 1/sqrt(fin)) init.
            bound = 1.0 / (fin ** 0.5)
            w = jax.random.uniform(kw, (fin, fout), jnp.float32, -bound, bound)
            b = jax.random.uniform(kb, (fout,), jnp.float32, -bound, bound)
            self.params.append((w, b))

            # Per-layer padding:
            #  - first layer keeps fin unpadded (raw input needs no feature pad)
            #  - deeper layers pad fin to 128-multiple (== previous padded fout)
            #  - every fout padded to a 128-multiple (lane-dense MXU output)
            fin_pad = fin if idx == 0 else _round_up(fin, 128)
            fout_pad = _round_up(fout, 128)
            wp = jnp.zeros((fin_pad, fout_pad), jnp.float32).at[:fin, :fout].set(w)
            bp = jnp.zeros((1, fout_pad), jnp.float32).at[0, :fout].set(b)
            # Padded weight ROWS stay zero: kills act(0) junk in padded act cols.
            w_padded.append(wp.astype(jnp.bfloat16))
            b_padded.append(bp)

        self.w_padded = w_padded
        self.b_padded = b_padded
        self.out_pad = _round_up(self.OUT_FEATURES, 128)

        act = activation
        out_feat = self.OUT_FEATURES
        out_pad = self.out_pad

        @jax.jit
        def _forward(x, weights, biases):
            B, Fin = x.shape
            # Batch tiling: one 16-aligned tile for small batches, 256-row
            # streamed tiles (double-buffered, megacore-parallel) for large ones.
            if B <= 256:
                tb = _round_up(max(B, 16), 16)
            else:
                tb = 256
            bpad = _round_up(B, tb)

            xb = x.astype(jnp.bfloat16)              # bf16 kernel boundary
            if bpad != B:
                # TODO(synk): fold the batch pad/slice into a ragged last tile
                # instead of a separate XLA pad; only matters for odd batch sizes.
                xb = jnp.zeros((bpad, Fin), jnp.bfloat16).at[:B].set(xb)

            # Explicit VMEM budget: resident weights + double-buffered x/out tiles.
            w_bytes = (sum(w.size * 2 for w in weights)
                       + sum(b.size * 4 for b in biases))
            tile_bytes = 2 * tb * Fin * 2 + 2 * tb * out_pad * 4
            vmem_limit = int(min(128 << 20, 2 * (w_bytes + tile_bytes) + (4 << 20)))

            flops = 2 * bpad * sum(w.shape[0] * w.shape[1] for w in weights)
            transc = 0 if act == "relu" else bpad * sum(
                w.shape[1] for w in weights[:-1])
            bytes_accessed = xb.size * 2 + w_bytes + bpad * out_pad * 4
            cost = pl.CostEstimate(flops=flops, transcendentals=transc,
                                   bytes_accessed=bytes_accessed)

            out_padded = mlp_forward(xb, weights, biases, activation=act,
                                     out_pad_width=out_pad, tb=tb,
                                     cost=cost, vmem_limit_bytes=vmem_limit)
            return out_padded[:B, :out_feat]

        self._forward = _forward

    def __call__(self, x):
        return self._forward(x, self.w_padded, self.b_padded)


def _reference_forward(x, params, activation):
    """Plain-JAX reference with the same bf16-operand / f32-accumulate scheme."""
    n = len(params)
    h = x.astype(jnp.bfloat16)
    for idx, (w, b) in enumerate(params):
        y = jnp.dot(h, w.astype(jnp.bfloat16),
                    preferred_element_type=jnp.float32) + b
        if idx < n - 1:
            h = _apply_activation(y, activation).astype(jnp.bfloat16)
        else:
            h = y
    return h


if __name__ == "__main__":
    key = jax.random.PRNGKey(0)
    k_model1, k_model2, k_x = jax.random.split(key, 3)

    input_size = 64
    num_layers = 3
    num_nodes = 32
    batch = 8

    x = jax.random.normal(k_x, (batch, input_size), jnp.float32)

    # ReLU model.
    model = NeuralNetPallas(input_size, num_layers, num_nodes, "relu", k_model1)
    out = jax.block_until_ready(model(x))
    assert out.shape == (batch, NeuralNetPallas.OUT_FEATURES)
    ref = _reference_forward(x, model.params, "relu")
    assert jnp.allclose(out, ref, atol=2e-2, rtol=2e-2), float(
        jnp.max(jnp.abs(out - ref)))

    # Sigmoid model (exercises the padded-column zero-row invariant, sigmoid(0)=0.5).
    model_s = NeuralNetPallas(input_size, num_layers, num_nodes, "sigmoid", k_model2)
    out_s = jax.block_until_ready(model_s(x))
    ref_s = _reference_forward(x, model_s.params, "sigmoid")
    assert jnp.allclose(out_s, ref_s, atol=2e-2, rtol=2e-2), float(
        jnp.max(jnp.abs(out_s - ref_s)))

    print("KERNEL_OK")
</pallas_src>

<mosaic_0001>
module attributes {stable_mosaic.version = 11 : i64} {
  func.func @_mlp_fused_kernel(%arg0: i32, %arg1: memref<16x64xbf16, #tpu.memory_space<vmem>>, %arg2: memref<64x128xbf16, #tpu.memory_space<vmem>>, %arg3: memref<1x128xf32, #tpu.memory_space<vmem>>, %arg4: memref<128x128xbf16, #tpu.memory_space<vmem>>, %arg5: memref<1x128xf32, #tpu.memory_space<vmem>>, %arg6: memref<128x128xbf16, #tpu.memory_space<vmem>>, %arg7: memref<1x128xf32, #tpu.memory_space<vmem>>, %arg8: memref<128x128xbf16, #tpu.memory_space<vmem>>, %arg9: memref<1x128xf32, #tpu.memory_space<vmem>>, %arg10: memref<16x128xf32, #tpu.memory_space<vmem>>) attributes {dimension_semantics = [#tpu.dimension_semantics<parallel>], iteration_bounds = array<i64: 1>, scalar_prefetch = 0 : i64, scratch_operands = 0 : i64, tpu.core_type = #tpu.core_type<tc>, window_params = [{transform_indices = @transform_0, window_bounds = array<i64: 16, 64>}, {pipeline_mode = #tpu.pipeline_mode<synchronous>, transform_indices = @transform_1, window_bounds = array<i64: 64, 128>}, {pipeline_mode = #tpu.pipeline_mode<synchronous>, transform_indices = @transform_2, window_bounds = array<i64: 1, 128>}, {pipeline_mode = #tpu.pipeline_mode<synchronous>, transform_indices = @transform_3, window_bounds = array<i64: 128, 128>}, {pipeline_mode = #tpu.pipeline_mode<synchronous>, transform_indices = @transform_4, window_bounds = array<i64: 1, 128>}, {pipeline_mode = #tpu.pipeline_mode<synchronous>, transform_indices = @transform_5, window_bounds = array<i64: 128, 128>}, {pipeline_mode = #tpu.pipeline_mode<synchronous>, transform_indices = @transform_6, window_bounds = array<i64: 1, 128>}, {pipeline_mode = #tpu.pipeline_mode<synchronous>, transform_indices = @transform_7, window_bounds = array<i64: 128, 128>}, {pipeline_mode = #tpu.pipeline_mode<synchronous>, transform_indices = @transform_8, window_bounds = array<i64: 1, 128>}, {transform_indices = @transform_9, window_bounds = array<i64: 16, 128>}]} {
    %c0 = arith.constant 0 : index
    %c0_0 = arith.constant 0 : index
    %0 = vector.load %arg1[%c0, %c0_0] : memref<16x64xbf16, #tpu.memory_space<vmem>>, vector<16x64xbf16>
    %c0_1 = arith.constant 0 : index
    %c0_2 = arith.constant 0 : index
    %1 = vector.load %arg2[%c0_1, %c0_2] : memref<64x128xbf16, #tpu.memory_space<vmem>>, vector<64x128xbf16>
    %c0_3 = arith.constant 0 : index
    %c0_4 = arith.constant 0 : index
    %2 = vector.load %arg3[%c0_3, %c0_4] : memref<1x128xf32, #tpu.memory_space<vmem>>, vector<1x128xf32>
    %cst = arith.constant dense<0.000000e+00> : vector<16x128xf32>
    %3 = tpu.matmul %0, %1, %cst {dimension_numbers = #tpu.dot_dimension_numbers<[1], [0], [0], [1], [0, 0, 1, 1], [], []>} : vector<16x64xbf16>, vector<64x128xbf16>, vector<16x128xf32> -> vector<16x128xf32>
    %4 = vector.broadcast %2 : vector<1x128xf32> to vector<16x128xf32>
    %5 = arith.addf %3, %4 : vector<16x128xf32>
    %cst_5 = arith.constant 0.000000e+00 : f32
    %6 = vector.broadcast %cst_5 : f32 to vector<16x128xf32>
    %7 = arith.maximumf %5, %6 : vector<16x128xf32>
    %8 = arith.truncf %7 : vector<16x128xf32> to vector<16x128xbf16>
    %c0_6 = arith.constant 0 : index
    %c0_7 = arith.constant 0 : index
    %9 = vector.load %arg4[%c0_6, %c0_7] : memref<128x128xbf16, #tpu.memory_space<vmem>>, vector<128x128xbf16>
    %c0_8 = arith.constant 0 : index
    %c0_9 = arith.constant 0 : index
    %10 = vector.load %arg5[%c0_8, %c0_9] : memref<1x128xf32, #tpu.memory_space<vmem>>, vector<1x128xf32>
    %cst_10 = arith.constant dense<0.000000e+00> : vector<16x128xf32>
    %11 = tpu.matmul %8, %9, %cst_10 {dimension_numbers = #tpu.dot_dimension_numbers<[1], [0], [0], [1], [0, 0, 1, 1], [], []>} : vector<16x128xbf16>, vector<128x128xbf16>, vector<16x128xf32> -> vector<16x128xf32>
    %12 = vector.broadcast %10 : vector<1x128xf32> to vector<16x128xf32>
    %13 = arith.addf %11, %12 : vector<16x128xf32>
    %cst_11 = arith.constant 0.000000e+00 : f32
    %14 = vector.broadcast %cst_11 : f32 to vector<16x128xf32>
    %15 = arith.maximumf %13, %14 : vector<16x128xf32>
    %16 = arith.truncf %15 : vector<16x128xf32> to vector<16x128xbf16>
    %c0_12 = arith.constant 0 : index
    %c0_13 = arith.constant 0 : index
    %17 = vector.load %arg6[%c0_12, %c0_13] : memref<128x128xbf16, #tpu.memory_space<vmem>>, vector<128x128xbf16>
    %c0_14 = arith.constant 0 : index
    %c0_15 = arith.constant 0 : index
    %18 = vector.load %arg7[%c0_14, %c0_15] : memref<1x128xf32, #tpu.memory_space<vmem>>, vector<1x128xf32>
    %cst_16 = arith.constant dense<0.000000e+00> : vector<16x128xf32>
    %19 = tpu.matmul %16, %17, %cst_16 {dimension_numbers = #tpu.dot_dimension_numbers<[1], [0], [0], [1], [0, 0, 1, 1], [], []>} : vector<16x128xbf16>, vector<128x128xbf16>, vector<16x128xf32> -> vector<16x128xf32>
    %20 = vector.broadcast %18 : vector<1x128xf32> to vector<16x128xf32>
    %21 = arith.addf %19, %20 : vector<16x128xf32>
    %cst_17 = arith.constant 0.000000e+00 : f32
    %22 = vector.broadcast %cst_17 : f32 to vector<16x128xf32>
    %23 = arith.maximumf %21, %22 : vector<16x128xf32>
    %24 = arith.truncf %23 : vector<16x128xf32> to vector<16x128xbf16>
    %c0_18 = arith.constant 0 : index
    %c0_19 = arith.constant 0 : index
    %25 = vector.load %arg8[%c0_18, %c0_19] : memref<128x128xbf16, #tpu.memory_space<vmem>>, vector<128x128xbf16>
    %c0_20 = arith.constant 0 : index
    %c0_21 = arith.constant 0 : index
    %26 = vector.load %arg9[%c0_20, %c0_21] : memref<1x128xf32, #tpu.memory_space<vmem>>, vector<1x128xf32>
    %cst_22 = arith.constant dense<0.000000e+00> : vector<16x128xf32>
    %27 = tpu.matmul %24, %25, %cst_22 {dimension_numbers = #tpu.dot_dimension_numbers<[1], [0], [0], [1], [0, 0, 1, 1], [], []>} : vector<16x128xbf16>, vector<128x128xbf16>, vector<16x128xf32> -> vector<16x128xf32>
    %28 = vector.broadcast %26 : vector<1x128xf32> to vector<16x128xf32>
    %29 = arith.addf %27, %28 : vector<16x128xf32>
    %c0_23 = arith.constant 0 : index
    %c0_24 = arith.constant 0 : index
    %30 = vector.load %arg10[%c0_23, %c0_24] : memref<16x128xf32, #tpu.memory_space<vmem>>, vector<16x128xf32>
    tpu.vector_store %arg10[%c0_23, %c0_24], %29 {strides = array<i32>} : memref<16x128xf32, #tpu.memory_space<vmem>>, vector<16x128xf32>,
    return
  }
  func.func @transform_0(%arg0: i32) -> (i32, i32) {
    %c0_i32 = arith.constant 0 : i32
    %c0_i32_0 = arith.constant 0 : i32
    return %arg0, %c0_i32 : i32, i32
  }
  func.func @transform_1(%arg0: i32) -> (i32, i32) {
    %c0_i32 = arith.constant 0 : i32
    %c0_i32_0 = arith.constant 0 : i32
    %c0_i32_1 = arith.constant 0 : i32
    return %c0_i32, %c0_i32_0 : i32, i32
  }
  func.func @transform_2(%arg0: i32) -> (i32, i32) {
    %c0_i32 = arith.constant 0 : i32
    %c0_i32_0 = arith.constant 0 : i32
    %c0_i32_1 = arith.constant 0 : i32
    return %c0_i32, %c0_i32_0 : i32, i32
  }
  func.func @transform_3(%arg0: i32) -> (i32, i32) {
    %c0_i32 = arith.constant 0 : i32
    %c0_i32_0 = arith.constant 0 : i32
    %c0_i32_1 = arith.constant 0 : i32
    return %c0_i32, %c0_i32_0 : i32, i32
  }
  func.func @transform_4(%arg0: i32) -> (i32, i32) {
    %c0_i32 = arith.constant 0 : i32
    %c0_i32_0 = arith.constant 0 : i32
    %c0_i32_1 = arith.constant 0 : i32
    return %c0_i32, %c0_i32_0 : i32, i32
  }
  func.func @transform_5(%arg0: i32) -> (i32, i32) {
    %c0_i32 = arith.constant 0 : i32
    %c0_i32_0 = arith.constant 0 : i32
    %c0_i32_1 = arith.constant 0 : i32
    return %c0_i32, %c0_i32_0 : i32, i32
  }
  func.func @transform_6(%arg0: i32) -> (i32, i32) {
    %c0_i32 = arith.constant 0 : i32
    %c0_i32_0 = arith.constant 0 : i32
    %c0_i32_1 = arith.constant 0 : i32
    return %c0_i32, %c0_i32_0 : i32, i32
  }
  func.func @transform_7(%arg0: i32) -> (i32, i32) {
    %c0_i32 = arith.constant 0 : i32
    %c0_i32_0 = arith.constant 0 : i32
    %c0_i32_1 = arith.constant 0 : i32
    return %c0_i32, %c0_i32_0 : i32, i32
  }
  func.func @transform_8(%arg0: i32) -> (i32, i32) {
    %c0_i32 = arith.constant 0 : i32
    %c0_i32_0 = arith.constant 0 : i32
    %c0_i32_1 = arith.constant 0 : i32
    return %c0_i32, %c0_i32_0 : i32, i32
  }
  func.func @transform_9(%arg0: i32) -> (i32, i32) {
    %c0_i32 = arith.constant 0 : i32
    %c0_i32_0 = arith.constant 0 : i32
    return %arg0, %c0_i32 : i32, i32
  }
}

</mosaic_0001>

<bundles_post_ra>
// kernel: _forward.1
= control target key start
LH: loop header
LB: loop body
LE: loop exit
PB: predicated region body
PF: predicated region fallthrough
CT: control target
= control target key end

     0   :  { %14 = vsyncpa [#allocation3], 0  ;;  %s991_s0 = inlined_call_operand.vmem [shape: bf16[16,64], index: 0, kind: input, shape index: {}]   ;;  %s992_s1 = inlined_call_operand.hbm [shape: bf16[64,128], index: 1, kind: input, shape index: {}]   ;;  %s993_s2 = inlined_call_operand.vmem [shape: f32[1,128], index: 2, kind: input, shape index: {}]   ;;  %s994_s3 = inlined_call_operand.hbm [shape: bf16[128,128], index: 3, kind: input, shape index: {}]   ;;  %s995_s4 = inlined_call_operand.vmem [shape: f32[1,128], index: 4, kind: input, shape index: {}]   ;;  %s996_s5 = inlined_call_operand.hbm [shape: bf16[128,128], index: 5, kind: input, shape index: {}]   ;;  %s997_s6 = inlined_call_operand.vmem [shape: f32[1,128], index: 6, kind: input, shape index: {}]   ;;  %s998_s7 = inlined_call_operand.hbm [shape: bf16[128,128], index: 7, kind: input, shape index: {}]   ;;  %s999_s8 = inlined_call_operand.vmem [shape: f32[1,128], index: 8, kind: input, shape index: {}]   ;;  %s1000_s9 = inlined_call_operand.vmem [shape: f32[16,128], index: 9, kind: output, shape index: {}]  }
   0x1   :  { %15 = vsyncpa [#allocation5], 0 }
   0x2   :  { %16 = vsyncpa [#allocation8], 0  ;;  %s802_s30 = smov [#allocation4]   ;;  %s803_s11 = smov [#allocation2]  }
   0x3   :  { %s38_s10 = sshll.u32 %s802_s30, 4  ;;  %s24_s12 = sshll.u32 %s803_s11, 4  ;;  %s39_s10 = int_to_ptr.vmem [resolvable:$true] %s38_s10  ;;  %s860_s12 = int_to_ptr.vmem [resolvable:$true] %s24_s12 }
   0x4   :  { %s708_s15 = scalar_lea.hbm %s994_s3, 1024 }
   0x5   :  { %p709_p0 = scmp.ne.s32.totalorder %s994_s3, %s708_s15  ;;  %p712_p1 = scmp.lt.u32.totalorder %s708_s15, %s994_s3 }
   0x7   :  { %p714_p2 = pnand %p712_p1, %p709_p0 }
   0x9   :  { %717 = shalt.err (!%p714_p2)
}
   0xa   :  { %s718_s20 = scalar_lea.vmem %s39_s10, 1024  ;;  %p723_p4 = scmp.lt.s32.totalorder %s39_s10, %s39_s10 }
   0xb   :  { %p719_p3 = scmp.ne.s32.totalorder %s39_s10, %s718_s20  ;;  %p724_p5 = scmp.lt.s32.totalorder %s718_s20, %s718_s20 }
   0xd   :  { %p725_p6 = por %p724_p5, %p723_p4 }
   0xf   :  { %p726_p7 = pnand %p725_p6, %p719_p3 }
  0x11   :  { %729 = shalt.err (!%p726_p7)
}
  0x12   :  { %s804_s21 = smov 64   ;;  %s805_s22 = smov 4  }
  0x13   :  { %44 = dma.hbm_to_vmem [thread:$0]  %s994_s3, 1024, %s39_s10, [#allocation5], %s804_s21, %s804_s21, %s805_s22  }
  0x14   :  { %s730_s27 = scalar_lea.hbm %s992_s1, 512 }
  0x15   :  { %p731_p8 = scmp.ne.s32.totalorder %s992_s1, %s730_s27  ;;  %p734_p9 = scmp.lt.u32.totalorder %s730_s27, %s992_s1 }
  0x17   :  { %p736_p10 = pnand %p734_p9, %p731_p8 }
  0x19   :  { %739 = shalt.err (!%p736_p10)
}
  0x1a   :  { %s740_s13 = scalar_lea.vmem %s860_s12, 512  ;;  %p745_p12 = scmp.lt.s32.totalorder %s860_s12, %s860_s12 }
  0x1b   :  { %p741_p11 = scmp.ne.s32.totalorder %s860_s12, %s740_s13  ;;  %p746_p13 = scmp.lt.s32.totalorder %s740_s13, %s740_s13 }
  0x1d   :  { %p747_p0 = por %p746_p13, %p745_p12 }
  0x1f   :  { %p748_p1 = pnand %p747_p0, %p741_p11 }
  0x21   :  { %751 = shalt.err (!%p748_p1)
}
  0x22   :  { %30 = dma.hbm_to_vmem [thread:$0]  %s992_s1, 512, %s860_s12, [#allocation3], %s804_s21, %s804_s21, %s805_s22  }
  0x23   :  { %s806_s14 = smov [#allocation6]   ;;  %s807_s16 = smov [#allocation7]  }
  0x24   :  { %s52_s15 = sshll.u32 %s806_s14, 4  ;;  %s66_s17 = sshll.u32 %s807_s16, 4  ;;  %s53_s15 = int_to_ptr.vmem [resolvable:$true] %s52_s15  ;;  %s897_s17 = int_to_ptr.vmem [resolvable:$true] %s66_s17 }
  0x25   :  { %s752_s20 = scalar_lea.hbm %s996_s5, 1024 }
  0x26   :  { %p753_p2 = scmp.ne.s32.totalorder %s996_s5, %s752_s20  ;;  %p756_p3 = scmp.lt.u32.totalorder %s752_s20, %s996_s5 }
  0x28   :  { %p758_p4 = pnand %p756_p3, %p753_p2 }
  0x2a   :  { %761 = shalt.err (!%p758_p4)
}
  0x2b   :  { %s762_s1 = scalar_lea.vmem %s53_s15, 1024  ;;  %p767_p6 = scmp.lt.s32.totalorder %s53_s15, %s53_s15 }
  0x2c   :  { %p763_p5 = scmp.ne.s32.totalorder %s53_s15, %s762_s1  ;;  %p768_p7 = scmp.lt.s32.totalorder %s762_s1, %s762_s1 }
  0x2e   :  { %p769_p8 = por %p768_p7, %p767_p6 }
  0x30   :  { %p770_p9 = pnand %p769_p8, %p763_p5 }
  0x32   :  { %773 = shalt.err (!%p770_p9)
}
  0x33   :  { %58 = dma.hbm_to_vmem [thread:$0]  %s996_s5, 1024, %s53_s15, [#allocation5], %s804_s21, %s804_s21, %s805_s22  }
  0x34   :  { %s774_s30 = scalar_lea.hbm %s998_s7, 1024 }
  0x35   :  { %p775_p10 = scmp.ne.s32.totalorder %s998_s7, %s774_s30  ;;  %p778_p11 = scmp.lt.u32.totalorder %s774_s30, %s998_s7 }
  0x37   :  { %p780_p12 = pnand %p778_p11, %p775_p10 }
  0x39   :  { %783 = shalt.err (!%p780_p12)
}
  0x3a   :  { %s784_s14 = scalar_lea.vmem %s897_s17, 1024  ;;  %p789_p0 = scmp.lt.s32.totalorder %s897_s17, %s897_s17 }
  0x3b   :  { %p785_p13 = scmp.ne.s32.totalorder %s897_s17, %s784_s14  ;;  %p790_p1 = scmp.lt.s32.totalorder %s784_s14, %s784_s14 }
  0x3d   :  { %p791_p2 = por %p790_p1, %p789_p0 }
  0x3f   :  { %p792_p3 = pnand %p791_p2, %p785_p13 }
  0x41   :  { %795 = shalt.err (!%p792_p3)
}
  0x42   :  { %72 = dma.hbm_to_vmem [thread:$0]  %s998_s7, 1024, %s897_s17, [#allocation8], %s804_s21, %s804_s21, %s805_s22  }
  0x43   :  { %796 = dma.done.wait [#allocation3], 512  }
  0x44   :  { %797 = vsyncadd [#allocation3], 4294966784 }
  0x45   :  { %798 = dma.done.wait [#allocation5], 2048  }
  0x46   :  { %799 = vsyncadd [#allocation5], 4294965248 }
  0x47   :  { %800 = dma.done.wait [#allocation8], 1024  }
  0x48   :  { %801 = vsyncadd [#allocation8], 4294966272  ;;  %v808_v0 = vmov 0.0   ;;  %vm809_vm0 = vmmov 0   ;;  %v679_v1 = vld [vmem:[#allocation2] sm:$0xff]   ;;  %v680_v2 = vld [vmem:[#allocation2 + $0x8] sm:$0xff]  }
  0x49   :  { %599 = vmatprep.subr.bf16.mxu0 %v808_v0  ;;  %607 = vmatprep.mubr.msk.bf16.mxu0 %vm809_vm0, %v808_v0  ;;  %v684_v3 = vld [vmem:[#allocation4] sm:$0xff]   ;;  %v681_v4 = vld [vmem:[#allocation2 + $0x10] sm:$0xff]   ;;  %v685_v5 = vld [vmem:[#allocation4 + $0x8] sm:$0xff]   ;;  %vm134_vm1 = vcmask 523264  }
  0x4a   :  { %611 = vmatprep.subr.bf16.mxu1 %v808_v0  ;;  %627 = vmatprep.mubr.msk.bf16.mxu1 %vm809_vm0, %v808_v0  ;;  %v682_v6 = vld [vmem:[#allocation2 + $0x18] sm:$0xff]   ;;  %v683_v7 = vld [vmem:[%s991_s0] sm:$0xff]   ;;  %v686_v8 = vld [vmem:[#allocation4 + $0x10] sm:$0xff]  }
  0x4b   :  { %600 = vmatpush3.bf16.msra.mxu0 %v679_v1  ;;  %612 = vmatpush3.bf16.msra.mxu1 %v684_v3  ;;  %v687_v9 = vld [vmem:[#allocation4 + $0x18] sm:$0xff]   ;;  %v688_v10 = vld [vmem:[#allocation4 + $0x20] sm:$0xff]   ;;  %v689_v11 = vld [vmem:[#allocation4 + $0x28] sm:$0xff]  }
  0x4c   :  { %601 = vmatprep.subr.bf16.mxu0 %v808_v0  ;;  %613 = vmatprep.subr.bf16.mxu1 %v808_v0  ;;  %v690_v12 = vld [vmem:[#allocation4 + $0x30] sm:$0xff]   ;;  %v691_v13 = vld [vmem:[#allocation4 + $0x38] sm:$0xff]   ;;  %v692_v14 = vld [vmem:[#allocation6] sm:$0xff]  }
  0x4d   :  { %v693_v15 = vld [vmem:[#allocation6 + $0x8] sm:$0xff]   ;;  %v694_v16 = vld [vmem:[#allocation6 + $0x10] sm:$0xff]   ;;  %v695_v17 = vld [vmem:[#allocation6 + $0x18] sm:$0xff]  }
  0x4e   :  { %v696_v18 = vld [vmem:[#allocation6 + $0x20] sm:$0xff]   ;;  %v697_v19 = vld [vmem:[#allocation6 + $0x28] sm:$0xff]   ;;  %v698_v30 = vld [vmem:[#allocation6 + $0x30] sm:$0xff]  }
  0x4f   :  { %602 = vmatpush3.bf16.msra.mxu0 %v680_v2  ;;  %614 = vmatpush3.bf16.msra.mxu1 %v685_v5  ;;  %v533_v20 = vld [vmem:[%s993_s2] ss:$0 sm:$0xff]  ;;  %v699_v31 = vld [vmem:[#allocation6 + $0x38] sm:$0xff]   ;;  %v701_v33 = vld [vmem:[#allocation7 + $0x8] sm:$0xff]  }
  0x50   :  { %603 = vmatprep.subr.bf16.mxu0 %v808_v0  ;;  %615 = vmatprep.subr.bf16.mxu1 %v808_v0  ;;  %v700_v32 = vld [vmem:[#allocation7] sm:$0xff]   ;;  %v702_v34 = vld [vmem:[#allocation7 + $0x10] sm:$0xff]   ;;  %v703_v35 = vld [vmem:[#allocation7 + $0x18] sm:$0xff]  }
  0x51   :  { %v704_v36 = vld [vmem:[#allocation7 + $0x20] sm:$0xff]   ;;  %v705_v37 = vld [vmem:[#allocation7 + $0x28] sm:$0xff]   ;;  %v706_v48 = vld [vmem:[#allocation7 + $0x30] sm:$0xff]  }
  0x52   :  { %v540_v38 = vld [vmem:[%s995_s4] ss:$0 sm:$0xff]  ;;  %v707_v49 = vld [vmem:[#allocation7 + $0x38] sm:$0xff]  }
  0x53   :  { %604 = vmatpush3.bf16.msra.mxu0 %v681_v4  ;;  %616 = vmatpush3.bf16.msra.mxu1 %v686_v8  ;;  %v549_v50 = vld [vmem:[%s997_s6] ss:$0 sm:$0xff] }
  0x54   :  { %605 = vmatprep.subr.bf16.mxu0 %v808_v0  ;;  %617 = vmatprep.subr.bf16.mxu1 %v808_v0  ;;  %v558_v60 = vld [vmem:[%s999_s8] ss:$0 sm:$0xff] }
  0x57   :  { %606 = vmatpush3.bf16.msra.mxu0 %v682_v6  ;;  %618 = vmatpush3.bf16.msra.mxu1 %v687_v9 }
  0x58   :  { %631 = vmatprep.subr.bf16.mxu0 %v808_v0  ;;  %619 = vmatprep.subr.bf16.mxu1 %v808_v0 }
  0x5a   :  { %608 = vmatmul.mubr.msk.bf16.vlgmr.msra.gmra.mrb[0].mxu0 %vm134_vm1, %v683_v7 }
  0x5b   :  { %647 = vmatprep.mubr.msk.bf16.mxu0 %vm809_vm0, %v808_v0  ;;  %620 = vmatpush3.bf16.msra.mxu1 %v688_v10 }
  0x5c   :  { %621 = vmatprep.subr.bf16.mxu1 %v808_v0  ;;  %632 = vmatpush3.bf16.msra.mxu0 %v692_v14 }
  0x5d   :  { %633 = vmatprep.subr.bf16.mxu0 %v808_v0 }
  0x5f   :  { %622 = vmatpush3.bf16.msra.mxu1 %v689_v11 }
  0x60   :  { %623 = vmatprep.subr.bf16.mxu1 %v808_v0  ;;  %634 = vmatpush3.bf16.msra.mxu0 %v693_v15 }
  0x61   :  { %635 = vmatprep.subr.bf16.mxu0 %v808_v0 }
  0x63   :  { %624 = vmatpush3.bf16.msra.mxu1 %v690_v12 }
  0x64   :  { %625 = vmatprep.subr.bf16.mxu1 %v808_v0  ;;  %636 = vmatpush3.bf16.msra.mxu0 %v694_v16 }
  0x65   :  { %637 = vmatprep.subr.bf16.mxu0 %v808_v0 }
  0x67   :  { %626 = vmatpush3.bf16.msra.mxu1 %v691_v13 }
  0x68   :  { %651 = vmatprep.subr.bf16.mxu1 %v808_v0  ;;  %638 = vmatpush3.bf16.msra.mxu0 %v695_v17 }
  0x69   :  { %639 = vmatprep.subr.bf16.mxu0 %v808_v0 }
  0x6c   :  { %640 = vmatpush3.bf16.msra.mxu0 %v696_v18 }
  0x6d   :  { %641 = vmatprep.subr.bf16.mxu0 %v808_v0 }
  0x70   :  { %642 = vmatpush3.bf16.msra.mxu0 %v697_v19 }
  0x71   :  { %643 = vmatprep.subr.bf16.mxu0 %v808_v0 }
  0x74   :  { %644 = vmatpush3.bf16.msra.mxu0 %v698_v30 }
  0x75   :  { %645 = vmatprep.subr.bf16.mxu0 %v808_v0 }
  0x78   :  { %646 = vmatpush3.bf16.msra.mxu0 %v699_v31 }
 0x12d   :  { %v172_v21 = vpop.f32.mrb[0].mxu0 }
 0x12e   :  { %v173_v22 = vadd.f32 %v533_v20, %v172_v21  ;;  %v609_v23 = vpop.f32.mrb[1].mxu0 }
 0x12f   :  { %v175_v24 = vpop.f32.mrb[2].mxu0 }
 0x130   :  { %v176_v25 = vadd.f32 %v533_v20, %v175_v24  ;;  %v610_v26 = vpop.f32.mrb[3].mxu0  ;;  %v179_v27 = vmax.f32 %v173_v22, 0.0 }
 0x132   :  { %v180_v28 = vmax.f32 %v176_v25, 0.0 }
 0x134   :  { %v181_v29 = vpack.c.bf16 %v180_v28, %v179_v27 }
 0x136   :  { %628 = vmatmul.mubr.bf16.vlgmr.msra.gmra.mrb[0].mxu1 %v181_v29 }
 0x137   :  { %667 = vmatprep.mubr.msk.bf16.mxu1 %vm809_vm0, %v808_v0  ;;  %652 = vmatpush3.bf16.msra.mxu1 %v700_v32 }
 0x138   :  { %653 = vmatprep.subr.bf16.mxu1 %v808_v0 }
 0x13b   :  { %654 = vmatpush3.bf16.msra.mxu1 %v701_v33 }
 0x13c   :  { %655 = vmatprep.subr.bf16.mxu1 %v808_v0 }
 0x13f   :  { %656 = vmatpush3.bf16.msra.mxu1 %v702_v34 }
 0x140   :  { %657 = vmatprep.subr.bf16.mxu1 %v808_v0 }
 0x143   :  { %658 = vmatpush3.bf16.msra.mxu1 %v703_v35 }
 0x144   :  { %659 = vmatprep.subr.bf16.mxu1 %v808_v0 }
 0x147   :  { %660 = vmatpush3.bf16.msra.mxu1 %v704_v36 }
 0x148   :  { %661 = vmatprep.subr.bf16.mxu1 %v808_v0 }
 0x14b   :  { %662 = vmatpush3.bf16.msra.mxu1 %v705_v37 }
 0x14c   :  { %663 = vmatprep.subr.bf16.mxu1 %v808_v0 }
 0x14f   :  { %664 = vmatpush3.bf16.msra.mxu1 %v706_v48 }
 0x150   :  { %665 = vmatprep.subr.bf16.mxu1 %v808_v0 }
 0x153   :  { %666 = vmatpush3.bf16.msra.mxu1 %v707_v49 }
 0x209   :  { %v287_v39 = vpop.f32.mrb[0].mxu1 }
 0x20a   :  { %v288_v40 = vadd.f32 %v540_v38, %v287_v39  ;;  %v629_v41 = vpop.f32.mrb[1].mxu1 }
 0x20b   :  { %v290_v42 = vpop.f32.mrb[2].mxu1 }
 0x20c   :  { %v291_v43 = vadd.f32 %v540_v38, %v290_v42  ;;  %v630_v44 = vpop.f32.mrb[3].mxu1  ;;  %v294_v45 = vmax.f32 %v288_v40, 0.0 }
 0x20e   :  { %v295_v46 = vmax.f32 %v291_v43, 0.0 }
 0x210   :  { %v296_v47 = vpack.c.bf16 %v295_v46, %v294_v45 }
 0x212   :  { %648 = vmatmul.mubr.bf16.vlgmr.msra.gmra.mrb[4].mxu0 %v296_v47 }
 0x2e5   :  { %v402_v51 = vpop.f32.mrb[4].mxu0 }
 0x2e6   :  { %v403_v52 = vadd.f32 %v549_v50, %v402_v51  ;;  %v649_v53 = vpop.f32.mrb[5].mxu0 }
 0x2e7   :  { %v405_v54 = vpop.f32.mrb[6].mxu0 }
 0x2e8   :  { %v406_v55 = vadd.f32 %v549_v50, %v405_v54  ;;  %v650_v56 = vpop.f32.mrb[7].mxu0  ;;  %v409_v57 = vmax.f32 %v403_v52, 0.0 }
 0x2ea   :  { %v410_v58 = vmax.f32 %v406_v55, 0.0 }
 0x2ec   :  { %v411_v59 = vpack.c.bf16 %v410_v58, %v409_v57 }
 0x2ee   :  { %668 = vmatmul.mubr.bf16.vlgmr.msra.gmra.mrb[4].mxu1 %v411_v59 }
 0x3c1   :  { %v517_v61 = vpop.f32.mrb[4].mxu1 }
 0x3c2   :  { %v518_v62 = vadd.f32 %v558_v60, %v517_v61  ;;  %v669_v63 = vpop.f32.mrb[5].mxu1 }
 0x3c3   :  { %v520_v0 = vpop.f32.mrb[6].mxu1 }
 0x3c4   :  { %524 = vst [vmem:[%s1000_s9] sm:$0xff] %v518_v62  ;;  %v521_v1 = vadd.f32 %v558_v60, %v520_v0  ;;  %v670_v2 = vpop.f32.mrb[7].mxu1 }
 0x3c6   :  { %525 = vst [vmem:[%s1000_s9 + $0x8] sm:$0xff] %v521_v1 }
 0x3c7   :  { %530 = vsyncpa [#allocation3], 1 }
 0x3c8   :  { %531 = vsyncpa [#allocation5], 1 }
 0x3c9   :  { %532 = vsyncpa [#allocation8], 1 }

</bundles_post_ra>
